<compile_context>
chip_gen: v7x
topology: tpu7x:2x2x1
jax: 0.10.0
libtpu: 0.0.40
codegen_flags: <defaults>
</compile_context>

<pallas_src>
import functools
import math

import jax
import jax.numpy as jnp
from jax.experimental import pallas as pl
from jax.experimental.pallas import tpu as pltpu


def encoder_block_kernel(
    x_ref,       # (L, D)  f32   — one batch element's rows
    wqkv_ref,    # (D, 3D) bf16  — [wq / sqrt(K) | wk | wv], head-major columns
    wo_ref,      # (D, D)  bf16  — rows head-major (H*K)
    g1_ref,      # (1, D) f32
    be1_ref,     # (1, D) f32
    g2_ref,      # (1, D) f32
    be2_ref,     # (1, D) f32
    w1_ref,      # (D, F) bf16
    b1_ref,      # (1, F) f32
    w2_ref,      # (F, D) bf16
    b2_ref,      # (1, D) f32
    o_ref,       # (L, D) f32
    ctx_ref,     # (L, D) f32 VMEM scratch — per-head context slab
    *,
    n_heads: int,
    head_dim: int,
):
    f32, bf16 = jnp.float32, jnp.bfloat16
    H, K = n_heads, head_dim
    L, D = x_ref.shape

    x = x_ref[...]                       # residual stream stays f32
    # Fused QKV projection: one wide bf16 MXU dot, f32 accumulation, and a
    # single bf16 cast of the result (largest activation intermediate).
    qkv = jnp.dot(x.astype(bf16), wqkv_ref[...],
                  preferred_element_type=f32).astype(bf16)        # (L, 3D)

    # Per-head attention inside this batch block. Score scale is baked into wq.
    # TODO(synk): for large L, replace the materialized (L, L) score tile with
    #             a flash-style online-softmax loop over KV tiles (mandatory
    #             inside v7x's 64 MiB VMEM); at L=8 the score tile is one vreg.
    # TODO(synk): at real H/L, fuse all heads into one batched
    #             'blhk,bmhk->bhlm' einsum instead of the static head loop.
    for h in range(H):
        qh = qkv[:, h * K:(h + 1) * K]                  # (L, K) bf16
        kh = qkv[:, D + h * K:D + (h + 1) * K]
        vh = qkv[:, 2 * D + h * K:2 * D + (h + 1) * K]

        s = jnp.einsum('lk,mk->lm', qh, kh,
                       preferred_element_type=f32)      # (L, L) f32
        s = s - jnp.max(s, axis=-1, keepdims=True)
        e = jnp.exp(s)
        p = e * pl.reciprocal(jnp.sum(e, axis=-1, keepdims=True), approx=True)
        # Write this head's context into its column slab of the VMEM scratch
        # (bounds live ranges; no growing functional accumulator).
        ctx_ref[:, h * K:(h + 1) * K] = jnp.dot(
            p.astype(bf16), vh, preferred_element_type=f32)

    # ONE full-depth output projection: (L, H*K) @ (H*K, D).
    attn = jnp.dot(ctx_ref[...].astype(bf16), wo_ref[...],
                   preferred_element_type=f32)           # (L, D)

    inv_d = 1.0 / float(D)

    def layer_norm(z, g, b):
        mu = jnp.sum(z, axis=-1, keepdims=True) * inv_d
        zc = z - mu
        var = jnp.sum(zc * zc, axis=-1, keepdims=True) * inv_d
        return zc * jax.lax.rsqrt(var + 1e-5) * g + b

    # ---- residual + LayerNorm 1 ----
    y1 = layer_norm(x + attn, g1_ref[...], be1_ref[...])

    # ---- FFN (bf16 MXU dots, f32 accumulation, f32 bias/ReLU) ----
    h1 = jnp.dot(y1.astype(bf16), w1_ref[...],
                 preferred_element_type=f32) + b1_ref[...]
    h1 = jnp.maximum(h1, 0.0)
    ffn = jnp.dot(h1.astype(bf16), w2_ref[...],
                  preferred_element_type=f32) + b2_ref[...]

    # ---- residual + LayerNorm 2 ----
    # TODO(synk): at this toy d_model=32 the store is below the 128-lane vreg
    #             width (masked vst); at the module's real d_model=512 the
    #             output is already lane-dense, so the slab-store rewrite is
    #             intentionally skipped here.
    o_ref[...] = layer_norm(y1 + ffn, g2_ref[...], be2_ref[...])


def prepare_params(params, *, n_heads, head_dim):
    """One-time host-side weight repacking (hoisted out of the per-call path):
    fuse QKV, fold 1/sqrt(K) into the Q columns, cast matmul weights to bf16."""
    bf16 = jnp.bfloat16
    inv_scale = 1.0 / math.sqrt(float(head_dim))
    wqkv = jnp.concatenate(
        [params["wq"] * inv_scale, params["wk"], params["wv"]],
        axis=1).astype(bf16)                               # (D, 3D)
    return {
        "wqkv": wqkv,
        "wo": params["wo"].astype(bf16),                   # (H*K, D)
        "w1": params["w1"].astype(bf16),                   # (D, F)
        "w2": params["w2"].astype(bf16),                   # (F, D)
        "g1": params["g1"], "be1": params["be1"],
        "g2": params["g2"], "be2": params["be2"],
        "b1": params["b1"], "b2": params["b2"],
    }


def _vmem_limit_bytes():
    # Raise the scoped-VMEM limit above the 32 MiB default; scale with the
    # chip's actual capacity when queryable (64 MiB v7x, 128 MiB v5e/v6e).
    try:
        cap = pltpu.get_tpu_info().vmem_capacity_bytes
    except Exception:
        cap = 64 * 1024 * 1024
    return int(min(cap * 3 // 4, 100 * 1024 * 1024))


def encoder_block(x, prepped, *, n_heads, head_dim):
    B, L, D = x.shape
    F = prepped["w1"].shape[1]
    H, K = n_heads, head_dim

    kernel = functools.partial(encoder_block_kernel, n_heads=H, head_dim=K)

    # Grid over batch: activation blocks are pipelined, weight blocks map to a
    # constant block index so they stay VMEM-resident across grid steps.
    row_spec = pl.BlockSpec((None, L, D), lambda b: (b, 0, 0))

    def resident(shape):
        return pl.BlockSpec(shape, lambda b, _s=shape: (0,) * len(_s))

    in_specs = [
        row_spec,                    # x
        resident((D, 3 * D)),        # wqkv
        resident((D, D)),            # wo
        resident((1, D)),            # g1
        resident((1, D)),            # be1
        resident((1, D)),            # g2
        resident((1, D)),            # be2
        resident((D, F)),            # w1
        resident((1, F)),            # b1
        resident((F, D)),            # w2
        resident((1, D)),            # b2
    ]

    BL = B * L
    flops = (2 * BL * D * 3 * D          # fused QKV projection
             + 4 * B * H * L * L * K     # scores + P@V
             + 2 * BL * D * D            # single full-depth WO projection
             + 4 * BL * D * F)           # FFN (two dots)
    transcendentals = B * H * L * L + B * H * L + 2 * BL
    bytes_accessed = (4 * x.size + 4 * BL * D
                      + 2 * (prepped["wqkv"].size + prepped["wo"].size
                             + prepped["w1"].size + prepped["w2"].size)
                      + 4 * (4 * D + F + D))

    out = pl.pallas_call(
        kernel,
        out_shape=jax.ShapeDtypeStruct((B, L, D), jnp.float32),
        grid_spec=pltpu.PrefetchScalarGridSpec(
            num_scalar_prefetch=0,
            grid=(B,),
            in_specs=in_specs,
            out_specs=row_spec,
            scratch_shapes=[pltpu.VMEM((L, D), jnp.float32)],
        ),
        compiler_params=pltpu.CompilerParams(
            dimension_semantics=("parallel",),
            vmem_limit_bytes=_vmem_limit_bytes(),
        ),
        cost_estimate=pl.CostEstimate(
            flops=flops,
            transcendentals=transcendentals,
            bytes_accessed=bytes_accessed),
    )(x,
      prepped["wqkv"], prepped["wo"],
      prepped["g1"], prepped["be1"], prepped["g2"], prepped["be2"],
      prepped["w1"], prepped["b1"], prepped["w2"], prepped["b2"])
    return out


def reference_encoder_block(x, params, *, n_heads, head_dim):
    """Pure-JAX f32 reference mirroring the PyTorch module semantics."""
    B, L, D = x.shape
    wq = params["wq"].reshape(D, n_heads, head_dim)
    wk = params["wk"].reshape(D, n_heads, head_dim)
    wv = params["wv"].reshape(D, n_heads, head_dim)
    wo = params["wo"].reshape(n_heads, head_dim, D)

    q = jnp.einsum("bld,dhk->blhk", x, wq)
    k = jnp.einsum("bld,dhk->blhk", x, wk)
    v = jnp.einsum("bld,dhk->blhk", x, wv)
    s = jnp.einsum("blhk,bmhk->bhlm", q, k) / jnp.sqrt(jnp.float32(head_dim))
    p = jax.nn.softmax(s, axis=-1)
    wtd = jnp.einsum("bhlm,bmhk->blhk", p, v)
    attn = jnp.einsum("blhk,hkd->bld", wtd, wo)

    def ln(z, g, b):
        mu = jnp.mean(z, -1, keepdims=True)
        var = jnp.mean((z - mu) ** 2, -1, keepdims=True)
        return (z - mu) * jax.lax.rsqrt(var + 1e-5) * g + b

    y1 = ln(x + attn, params["g1"][0], params["be1"][0])
    h = jnp.maximum(y1 @ params["w1"] + params["b1"][0], 0.0)
    f = h @ params["w2"] + params["b2"][0]
    return ln(y1 + f, params["g2"][0], params["be2"][0])


if __name__ == "__main__":
    # Small shapes consistent with the module: d_model=32, n_heads=4, dff=64.
    B, L, D, H, F = 2, 8, 32, 4, 64
    K = D // H

    key = jax.random.PRNGKey(0)
    ks = jax.random.split(key, 8)
    params = {
        "wq": 0.1 * jax.random.normal(ks[0], (D, D), jnp.float32),
        "wk": 0.1 * jax.random.normal(ks[1], (D, D), jnp.float32),
        "wv": 0.1 * jax.random.normal(ks[2], (D, D), jnp.float32),
        "wo": 0.1 * jax.random.normal(ks[3], (D, D), jnp.float32),
        "g1": jnp.ones((1, D), jnp.float32),
        "be1": jnp.zeros((1, D), jnp.float32),
        "g2": jnp.ones((1, D), jnp.float32),
        "be2": jnp.zeros((1, D), jnp.float32),
        "w1": 0.1 * jax.random.normal(ks[4], (D, F), jnp.float32),
        "b1": 0.01 * jax.random.normal(ks[5], (1, F), jnp.float32),
        "w2": 0.1 * jax.random.normal(ks[6], (F, D), jnp.float32),
        "b2": 0.01 * jax.random.normal(ks[7], (1, D), jnp.float32),
    }
    x = jax.random.normal(key, (B, L, D), jnp.float32)

    prepped = prepare_params(params, n_heads=H, head_dim=K)  # one-time prep
    out = encoder_block(x, prepped, n_heads=H, head_dim=K)
    out = jax.block_until_ready(out)

    ref = reference_encoder_block(x, params, n_heads=H, head_dim=K)
    assert out.shape == (B, L, D)
    # bf16 MXU inputs + approx reciprocal + folded scale -> relaxed tolerance.
    err = jnp.max(jnp.abs(out - ref))
    assert jnp.allclose(out, ref, atol=5e-2, rtol=5e-2), \
        f"mismatch vs reference (max abs err={err})"

    print("KERNEL_OK")
</pallas_src>

<mosaic_0001>
module attributes {stable_mosaic.version = 11 : i64} {
  func.func @encoder_block_kernel(%arg0: i32, %arg1: memref<1x8x32xf32, #tpu.memory_space<vmem>>, %arg2: memref<32x96xbf16, #tpu.memory_space<vmem>>, %arg3: memref<32x32xbf16, #tpu.memory_space<vmem>>, %arg4: memref<1x32xf32, #tpu.memory_space<vmem>>, %arg5: memref<1x32xf32, #tpu.memory_space<vmem>>, %arg6: memref<1x32xf32, #tpu.memory_space<vmem>>, %arg7: memref<1x32xf32, #tpu.memory_space<vmem>>, %arg8: memref<32x64xbf16, #tpu.memory_space<vmem>>, %arg9: memref<1x64xf32, #tpu.memory_space<vmem>>, %arg10: memref<64x32xbf16, #tpu.memory_space<vmem>>, %arg11: memref<1x32xf32, #tpu.memory_space<vmem>>, %arg12: memref<1x8x32xf32, #tpu.memory_space<vmem>>, %arg13: memref<8x32xf32, #tpu.memory_space<vmem>>) attributes {dimension_semantics = [#tpu.dimension_semantics<parallel>], iteration_bounds = array<i64: 2>, scalar_prefetch = 0 : i64, scratch_operands = 1 : i64, tpu.core_type = #tpu.core_type<tc>, window_params = [{transform_indices = @transform_0, window_bounds = array<i64: 1, 8, 32>}, {pipeline_mode = #tpu.pipeline_mode<synchronous>, transform_indices = @transform_1, window_bounds = array<i64: 32, 96>}, {pipeline_mode = #tpu.pipeline_mode<synchronous>, transform_indices = @transform_2, window_bounds = array<i64: 32, 32>}, {pipeline_mode = #tpu.pipeline_mode<synchronous>, transform_indices = @transform_3, window_bounds = array<i64: 1, 32>}, {pipeline_mode = #tpu.pipeline_mode<synchronous>, transform_indices = @transform_4, window_bounds = array<i64: 1, 32>}, {pipeline_mode = #tpu.pipeline_mode<synchronous>, transform_indices = @transform_5, window_bounds = array<i64: 1, 32>}, {pipeline_mode = #tpu.pipeline_mode<synchronous>, transform_indices = @transform_6, window_bounds = array<i64: 1, 32>}, {pipeline_mode = #tpu.pipeline_mode<synchronous>, transform_indices = @transform_7, window_bounds = array<i64: 32, 64>}, {pipeline_mode = #tpu.pipeline_mode<synchronous>, transform_indices = @transform_8, window_bounds = array<i64: 1, 64>}, {pipeline_mode = #tpu.pipeline_mode<synchronous>, transform_indices = @transform_9, window_bounds = array<i64: 64, 32>}, {pipeline_mode = #tpu.pipeline_mode<synchronous>, transform_indices = @transform_10, window_bounds = array<i64: 1, 32>}, {transform_indices = @transform_11, window_bounds = array<i64: 1, 8, 32>}]} {
    %c0 = arith.constant 0 : index
    %c0_0 = arith.constant 0 : index
    %c0_1 = arith.constant 0 : index
    %0 = vector.load %arg1[%c0, %c0_0, %c0_1] : memref<1x8x32xf32, #tpu.memory_space<vmem>>, vector<1x8x32xf32>
    %1 = vector.shape_cast %0 : vector<1x8x32xf32> to vector<8x32xf32>
    %2 = arith.truncf %1 : vector<8x32xf32> to vector<8x32xbf16>
    %c0_2 = arith.constant 0 : index
    %c0_3 = arith.constant 0 : index
    %3 = vector.load %arg2[%c0_2, %c0_3] : memref<32x96xbf16, #tpu.memory_space<vmem>>, vector<32x96xbf16>
    %cst = arith.constant dense<0.000000e+00> : vector<8x96xf32>
    %4 = tpu.matmul %2, %3, %cst {dimension_numbers = #tpu.dot_dimension_numbers<[1], [0], [0], [1], [0, 0, 1, 1], [], []>} : vector<8x32xbf16>, vector<32x96xbf16>, vector<8x96xf32> -> vector<8x96xf32>
    %5 = arith.truncf %4 : vector<8x96xf32> to vector<8x96xbf16>
    %6 = vector.extract_strided_slice %5 {offsets = [0, 0], sizes = [8, 8], strides = [1, 1]} : vector<8x96xbf16> to vector<8x8xbf16>
    %7 = vector.extract_strided_slice %5 {offsets = [0, 32], sizes = [8, 8], strides = [1, 1]} : vector<8x96xbf16> to vector<8x8xbf16>
    %8 = vector.extract_strided_slice %5 {offsets = [0, 64], sizes = [8, 8], strides = [1, 1]} : vector<8x96xbf16> to vector<8x8xbf16>
    "tpu.trace_start"() <{level = 10 : i32, message = "lk,mk->lm"}> : () -> ()
    %cst_4 = arith.constant dense<0.000000e+00> : vector<8x8xf32>
    %9 = tpu.matmul %6, %7, %cst_4 {dimension_numbers = #tpu.dot_dimension_numbers<[1], [1], [0], [0], [0, 0, 1, 0], [], []>} : vector<8x8xbf16>, vector<8x8xbf16>, vector<8x8xf32> -> vector<8x8xf32>
    "tpu.trace_stop"() : () -> ()
    %cst_5 = arith.constant dense<0xFF800000> : vector<8xf32>
    %10 = vector.multi_reduction <maximumf>, %9, %cst_5 [1] : vector<8x8xf32> to vector<8xf32>
    %11 = vector.shape_cast %10 : vector<8xf32> to vector<8x1xf32>
    %12 = vector.broadcast %11 : vector<8x1xf32> to vector<8x8xf32>
    %13 = arith.subf %9, %12 : vector<8x8xf32>
    %14 = math.exp %13 : vector<8x8xf32>
    %cst_6 = arith.constant dense<0.000000e+00> : vector<8xf32>
    %15 = vector.multi_reduction <add>, %14, %cst_6 [1] : vector<8x8xf32> to vector<8xf32>
    %16 = vector.shape_cast %15 : vector<8xf32> to vector<8x1xf32>
    %17 = tpu.reciprocal %16 {approx = true} : vector<8x1xf32> -> vector<8x1xf32>
    %18 = vector.broadcast %17 : vector<8x1xf32> to vector<8x8xf32>
    %19 = arith.mulf %14, %18 : vector<8x8xf32>
    %20 = arith.truncf %19 : vector<8x8xf32> to vector<8x8xbf16>
    %cst_7 = arith.constant dense<0.000000e+00> : vector<8x8xf32>
    %21 = tpu.matmul %20, %8, %cst_7 {dimension_numbers = #tpu.dot_dimension_numbers<[1], [0], [0], [1], [0, 0, 1, 1], [], []>} : vector<8x8xbf16>, vector<8x8xbf16>, vector<8x8xf32> -> vector<8x8xf32>
    %c0_8 = arith.constant 0 : index
    %c0_9 = arith.constant 0 : index
    %22 = vector.load %arg13[%c0_8, %c0_9] : memref<8x32xf32, #tpu.memory_space<vmem>>, vector<8x8xf32>
    tpu.vector_store %arg13[%c0_8, %c0_9], %21 {strides = array<i32>} : memref<8x32xf32, #tpu.memory_space<vmem>>, vector<8x8xf32>,
    %23 = vector.extract_strided_slice %5 {offsets = [0, 8], sizes = [8, 8], strides = [1, 1]} : vector<8x96xbf16> to vector<8x8xbf16>
    %24 = vector.extract_strided_slice %5 {offsets = [0, 40], sizes = [8, 8], strides = [1, 1]} : vector<8x96xbf16> to vector<8x8xbf16>
    %25 = vector.extract_strided_slice %5 {offsets = [0, 72], sizes = [8, 8], strides = [1, 1]} : vector<8x96xbf16> to vector<8x8xbf16>
    "tpu.trace_start"() <{level = 10 : i32, message = "lk,mk->lm"}> : () -> ()
    %cst_10 = arith.constant dense<0.000000e+00> : vector<8x8xf32>
    %26 = tpu.matmul %23, %24, %cst_10 {dimension_numbers = #tpu.dot_dimension_numbers<[1], [1], [0], [0], [0, 0, 1, 0], [], []>} : vector<8x8xbf16>, vector<8x8xbf16>, vector<8x8xf32> -> vector<8x8xf32>
    "tpu.trace_stop"() : () -> ()
    %cst_11 = arith.constant dense<0xFF800000> : vector<8xf32>
    %27 = vector.multi_reduction <maximumf>, %26, %cst_11 [1] : vector<8x8xf32> to vector<8xf32>
    %28 = vector.shape_cast %27 : vector<8xf32> to vector<8x1xf32>
    %29 = vector.broadcast %28 : vector<8x1xf32> to vector<8x8xf32>
    %30 = arith.subf %26, %29 : vector<8x8xf32>
    %31 = math.exp %30 : vector<8x8xf32>
    %cst_12 = arith.constant dense<0.000000e+00> : vector<8xf32>
    %32 = vector.multi_reduction <add>, %31, %cst_12 [1] : vector<8x8xf32> to vector<8xf32>
    %33 = vector.shape_cast %32 : vector<8xf32> to vector<8x1xf32>
    %34 = tpu.reciprocal %33 {approx = true} : vector<8x1xf32> -> vector<8x1xf32>
    %35 = vector.broadcast %34 : vector<8x1xf32> to vector<8x8xf32>
    %36 = arith.mulf %31, %35 : vector<8x8xf32>
    %37 = arith.truncf %36 : vector<8x8xf32> to vector<8x8xbf16>
    %cst_13 = arith.constant dense<0.000000e+00> : vector<8x8xf32>
    %38 = tpu.matmul %37, %25, %cst_13 {dimension_numbers = #tpu.dot_dimension_numbers<[1], [0], [0], [1], [0, 0, 1, 1], [], []>} : vector<8x8xbf16>, vector<8x8xbf16>, vector<8x8xf32> -> vector<8x8xf32>
    %c0_14 = arith.constant 0 : index
    %c8 = arith.constant 8 : index
    %39 = vector.load %arg13[%c0_14, %c8] : memref<8x32xf32, #tpu.memory_space<vmem>>, vector<8x8xf32>
    tpu.vector_store %arg13[%c0_14, %c8], %38 {strides = array<i32>} : memref<8x32xf32, #tpu.memory_space<vmem>>, vector<8x8xf32>,
    %40 = vector.extract_strided_slice %5 {offsets = [0, 16], sizes = [8, 8], strides = [1, 1]} : vector<8x96xbf16> to vector<8x8xbf16>
    %41 = vector.extract_strided_slice %5 {offsets = [0, 48], sizes = [8, 8], strides = [1, 1]} : vector<8x96xbf16> to vector<8x8xbf16>
    %42 = vector.extract_strided_slice %5 {offsets = [0, 80], sizes = [8, 8], strides = [1, 1]} : vector<8x96xbf16> to vector<8x8xbf16>
    "tpu.trace_start"() <{level = 10 : i32, message = "lk,mk->lm"}> : () -> ()
    %cst_15 = arith.constant dense<0.000000e+00> : vector<8x8xf32>
    %43 = tpu.matmul %40, %41, %cst_15 {dimension_numbers = #tpu.dot_dimension_numbers<[1], [1], [0], [0], [0, 0, 1, 0], [], []>} : vector<8x8xbf16>, vector<8x8xbf16>, vector<8x8xf32> -> vector<8x8xf32>
    "tpu.trace_stop"() : () -> ()
    %cst_16 = arith.constant dense<0xFF800000> : vector<8xf32>
    %44 = vector.multi_reduction <maximumf>, %43, %cst_16 [1] : vector<8x8xf32> to vector<8xf32>
    %45 = vector.shape_cast %44 : vector<8xf32> to vector<8x1xf32>
    %46 = vector.broadcast %45 : vector<8x1xf32> to vector<8x8xf32>
    %47 = arith.subf %43, %46 : vector<8x8xf32>
    %48 = math.exp %47 : vector<8x8xf32>
    %cst_17 = arith.constant dense<0.000000e+00> : vector<8xf32>
    %49 = vector.multi_reduction <add>, %48, %cst_17 [1] : vector<8x8xf32> to vector<8xf32>
    %50 = vector.shape_cast %49 : vector<8xf32> to vector<8x1xf32>
    %51 = tpu.reciprocal %50 {approx = true} : vector<8x1xf32> -> vector<8x1xf32>
    %52 = vector.broadcast %51 : vector<8x1xf32> to vector<8x8xf32>
    %53 = arith.mulf %48, %52 : vector<8x8xf32>
    %54 = arith.truncf %53 : vector<8x8xf32> to vector<8x8xbf16>
    %cst_18 = arith.constant dense<0.000000e+00> : vector<8x8xf32>
    %55 = tpu.matmul %54, %42, %cst_18 {dimension_numbers = #tpu.dot_dimension_numbers<[1], [0], [0], [1], [0, 0, 1, 1], [], []>} : vector<8x8xbf16>, vector<8x8xbf16>, vector<8x8xf32> -> vector<8x8xf32>
    %c0_19 = arith.constant 0 : index
    %c16 = arith.constant 16 : index
    %56 = vector.load %arg13[%c0_19, %c16] : memref<8x32xf32, #tpu.memory_space<vmem>>, vector<8x8xf32>
    tpu.vector_store %arg13[%c0_19, %c16], %55 {strides = array<i32>} : memref<8x32xf32, #tpu.memory_space<vmem>>, vector<8x8xf32>,
    %57 = vector.extract_strided_slice %5 {offsets = [0, 24], sizes = [8, 8], strides = [1, 1]} : vector<8x96xbf16> to vector<8x8xbf16>
    %58 = vector.extract_strided_slice %5 {offsets = [0, 56], sizes = [8, 8], strides = [1, 1]} : vector<8x96xbf16> to vector<8x8xbf16>
    %59 = vector.extract_strided_slice %5 {offsets = [0, 88], sizes = [8, 8], strides = [1, 1]} : vector<8x96xbf16> to vector<8x8xbf16>
    "tpu.trace_start"() <{level = 10 : i32, message = "lk,mk->lm"}> : () -> ()
    %cst_20 = arith.constant dense<0.000000e+00> : vector<8x8xf32>
    %60 = tpu.matmul %57, %58, %cst_20 {dimension_numbers = #tpu.dot_dimension_numbers<[1], [1], [0], [0], [0, 0, 1, 0], [], []>} : vector<8x8xbf16>, vector<8x8xbf16>, vector<8x8xf32> -> vector<8x8xf32>
    "tpu.trace_stop"() : () -> ()
    %cst_21 = arith.constant dense<0xFF800000> : vector<8xf32>
    %61 = vector.multi_reduction <maximumf>, %60, %cst_21 [1] : vector<8x8xf32> to vector<8xf32>
    %62 = vector.shape_cast %61 : vector<8xf32> to vector<8x1xf32>
    %63 = vector.broadcast %62 : vector<8x1xf32> to vector<8x8xf32>
    %64 = arith.subf %60, %63 : vector<8x8xf32>
    %65 = math.exp %64 : vector<8x8xf32>
    %cst_22 = arith.constant dense<0.000000e+00> : vector<8xf32>
    %66 = vector.multi_reduction <add>, %65, %cst_22 [1] : vector<8x8xf32> to vector<8xf32>
    %67 = vector.shape_cast %66 : vector<8xf32> to vector<8x1xf32>
    %68 = tpu.reciprocal %67 {approx = true} : vector<8x1xf32> -> vector<8x1xf32>
    %69 = vector.broadcast %68 : vector<8x1xf32> to vector<8x8xf32>
    %70 = arith.mulf %65, %69 : vector<8x8xf32>
    %71 = arith.truncf %70 : vector<8x8xf32> to vector<8x8xbf16>
    %cst_23 = arith.constant dense<0.000000e+00> : vector<8x8xf32>
    %72 = tpu.matmul %71, %59, %cst_23 {dimension_numbers = #tpu.dot_dimension_numbers<[1], [0], [0], [1], [0, 0, 1, 1], [], []>} : vector<8x8xbf16>, vector<8x8xbf16>, vector<8x8xf32> -> vector<8x8xf32>
    %c0_24 = arith.constant 0 : index
    %c24 = arith.constant 24 : index
    %73 = vector.load %arg13[%c0_24, %c24] : memref<8x32xf32, #tpu.memory_space<vmem>>, vector<8x8xf32>
    tpu.vector_store %arg13[%c0_24, %c24], %72 {strides = array<i32>} : memref<8x32xf32, #tpu.memory_space<vmem>>, vector<8x8xf32>,
    %c0_25 = arith.constant 0 : index
    %c0_26 = arith.constant 0 : index
    %74 = vector.load %arg13[%c0_25, %c0_26] : memref<8x32xf32, #tpu.memory_space<vmem>>, vector<8x32xf32>
    %75 = arith.truncf %74 : vector<8x32xf32> to vector<8x32xbf16>
    %c0_27 = arith.constant 0 : index
    %c0_28 = arith.constant 0 : index
    %76 = vector.load %arg3[%c0_27, %c0_28] : memref<32x32xbf16, #tpu.memory_space<vmem>>, vector<32x32xbf16>
    %cst_29 = arith.constant dense<0.000000e+00> : vector<8x32xf32>
    %77 = tpu.matmul %75, %76, %cst_29 {dimension_numbers = #tpu.dot_dimension_numbers<[1], [0], [0], [1], [0, 0, 1, 1], [], []>} : vector<8x32xbf16>, vector<32x32xbf16>, vector<8x32xf32> -> vector<8x32xf32>
    %78 = arith.addf %1, %77 : vector<8x32xf32>
    %c0_30 = arith.constant 0 : index
    %c0_31 = arith.constant 0 : index
    %79 = vector.load %arg4[%c0_30, %c0_31] : memref<1x32xf32, #tpu.memory_space<vmem>>, vector<1x32xf32>
    %c0_32 = arith.constant 0 : index
    %c0_33 = arith.constant 0 : index
    %80 = vector.load %arg5[%c0_32, %c0_33] : memref<1x32xf32, #tpu.memory_space<vmem>>, vector<1x32xf32>
    %cst_34 = arith.constant dense<0.000000e+00> : vector<8xf32>
    %81 = vector.multi_reduction <add>, %78, %cst_34 [1] : vector<8x32xf32> to vector<8xf32>
    %82 = vector.shape_cast %81 : vector<8xf32> to vector<8x1xf32>
    %cst_35 = arith.constant 3.125000e-02 : f32
    %83 = vector.broadcast %cst_35 : f32 to vector<8x1xf32>
    %84 = arith.mulf %82, %83 : vector<8x1xf32>
    %85 = vector.broadcast %84 : vector<8x1xf32> to vector<8x32xf32>
    %86 = arith.subf %78, %85 : vector<8x32xf32>
    %87 = arith.mulf %86, %86 : vector<8x32xf32>
    %cst_36 = arith.constant dense<0.000000e+00> : vector<8xf32>
    %88 = vector.multi_reduction <add>, %87, %cst_36 [1] : vector<8x32xf32> to vector<8xf32>
    %89 = vector.shape_cast %88 : vector<8xf32> to vector<8x1xf32>
    %cst_37 = arith.constant 3.125000e-02 : f32
    %90 = vector.broadcast %cst_37 : f32 to vector<8x1xf32>
    %91 = arith.mulf %89, %90 : vector<8x1xf32>
    %cst_38 = arith.constant 9.99999974E-6 : f32
    %92 = vector.broadcast %cst_38 : f32 to vector<8x1xf32>
    %93 = arith.addf %91, %92 : vector<8x1xf32>
    %94 = math.rsqrt %93 : vector<8x1xf32>
    %95 = vector.broadcast %94 : vector<8x1xf32> to vector<8x32xf32>
    %96 = arith.mulf %86, %95 : vector<8x32xf32>
    %97 = vector.broadcast %79 : vector<1x32xf32> to vector<8x32xf32>
    %98 = arith.mulf %96, %97 : vector<8x32xf32>
    %99 = vector.broadcast %80 : vector<1x32xf32> to vector<8x32xf32>
    %100 = arith.addf %98, %99 : vector<8x32xf32>
    %101 = arith.truncf %100 : vector<8x32xf32> to vector<8x32xbf16>
    %c0_39 = arith.constant 0 : index
    %c0_40 = arith.constant 0 : index
    %102 = vector.load %arg8[%c0_39, %c0_40] : memref<32x64xbf16, #tpu.memory_space<vmem>>, vector<32x64xbf16>
    %cst_41 = arith.constant dense<0.000000e+00> : vector<8x64xf32>
    %103 = tpu.matmul %101, %102, %cst_41 {dimension_numbers = #tpu.dot_dimension_numbers<[1], [0], [0], [1], [0, 0, 1, 1], [], []>} : vector<8x32xbf16>, vector<32x64xbf16>, vector<8x64xf32> -> vector<8x64xf32>
    %c0_42 = arith.constant 0 : index
    %c0_43 = arith.constant 0 : index
    %104 = vector.load %arg9[%c0_42, %c0_43] : memref<1x64xf32, #tpu.memory_space<vmem>>, vector<1x64xf32>
    %105 = vector.broadcast %104 : vector<1x64xf32> to vector<8x64xf32>
    %106 = arith.addf %103, %105 : vector<8x64xf32>
    %cst_44 = arith.constant 0.000000e+00 : f32
    %107 = vector.broadcast %cst_44 : f32 to vector<8x64xf32>
    %108 = arith.maximumf %106, %107 : vector<8x64xf32>
    %109 = arith.truncf %108 : vector<8x64xf32> to vector<8x64xbf16>
    %c0_45 = arith.constant 0 : index
    %c0_46 = arith.constant 0 : index
    %110 = vector.load %arg10[%c0_45, %c0_46] : memref<64x32xbf16, #tpu.memory_space<vmem>>, vector<64x32xbf16>
    %cst_47 = arith.constant dense<0.000000e+00> : vector<8x32xf32>
    %111 = tpu.matmul %109, %110, %cst_47 {dimension_numbers = #tpu.dot_dimension_numbers<[1], [0], [0], [1], [0, 0, 1, 1], [], []>} : vector<8x64xbf16>, vector<64x32xbf16>, vector<8x32xf32> -> vector<8x32xf32>
    %c0_48 = arith.constant 0 : index
    %c0_49 = arith.constant 0 : index
    %112 = vector.load %arg11[%c0_48, %c0_49] : memref<1x32xf32, #tpu.memory_space<vmem>>, vector<1x32xf32>
    %113 = vector.broadcast %112 : vector<1x32xf32> to vector<8x32xf32>
    %114 = arith.addf %111, %113 : vector<8x32xf32>
    %115 = arith.addf %100, %114 : vector<8x32xf32>
    %c0_50 = arith.constant 0 : index
    %c0_51 = arith.constant 0 : index
    %116 = vector.load %arg6[%c0_50, %c0_51] : memref<1x32xf32, #tpu.memory_space<vmem>>, vector<1x32xf32>
    %c0_52 = arith.constant 0 : index
    %c0_53 = arith.constant 0 : index
    %117 = vector.load %arg7[%c0_52, %c0_53] : memref<1x32xf32, #tpu.memory_space<vmem>>, vector<1x32xf32>
    %cst_54 = arith.constant dense<0.000000e+00> : vector<8xf32>
    %118 = vector.multi_reduction <add>, %115, %cst_54 [1] : vector<8x32xf32> to vector<8xf32>
    %119 = vector.shape_cast %118 : vector<8xf32> to vector<8x1xf32>
    %cst_55 = arith.constant 3.125000e-02 : f32
    %120 = vector.broadcast %cst_55 : f32 to vector<8x1xf32>
    %121 = arith.mulf %119, %120 : vector<8x1xf32>
    %122 = vector.broadcast %121 : vector<8x1xf32> to vector<8x32xf32>
    %123 = arith.subf %115, %122 : vector<8x32xf32>
    %124 = arith.mulf %123, %123 : vector<8x32xf32>
    %cst_56 = arith.constant dense<0.000000e+00> : vector<8xf32>
    %125 = vector.multi_reduction <add>, %124, %cst_56 [1] : vector<8x32xf32> to vector<8xf32>
    %126 = vector.shape_cast %125 : vector<8xf32> to vector<8x1xf32>
    %cst_57 = arith.constant 3.125000e-02 : f32
    %127 = vector.broadcast %cst_57 : f32 to vector<8x1xf32>
    %128 = arith.mulf %126, %127 : vector<8x1xf32>
    %cst_58 = arith.constant 9.99999974E-6 : f32
    %129 = vector.broadcast %cst_58 : f32 to vector<8x1xf32>
    %130 = arith.addf %128, %129 : vector<8x1xf32>
    %131 = math.rsqrt %130 : vector<8x1xf32>
    %132 = vector.broadcast %131 : vector<8x1xf32> to vector<8x32xf32>
    %133 = arith.mulf %123, %132 : vector<8x32xf32>
    %134 = vector.broadcast %116 : vector<1x32xf32> to vector<8x32xf32>
    %135 = arith.mulf %133, %134 : vector<8x32xf32>
    %136 = vector.broadcast %117 : vector<1x32xf32> to vector<8x32xf32>
    %137 = arith.addf %135, %136 : vector<8x32xf32>
    %c0_59 = arith.constant 0 : index
    %c0_60 = arith.constant 0 : index
    %c0_61 = arith.constant 0 : index
    %138 = vector.load %arg12[%c0_59, %c0_60, %c0_61] : memref<1x8x32xf32, #tpu.memory_space<vmem>>, vector<1x8x32xf32>
    %139 = vector.shape_cast %138 : vector<1x8x32xf32> to vector<8x32xf32>
    %140 = vector.shape_cast %137 : vector<8x32xf32> to vector<1x8x32xf32>
    tpu.vector_store %arg12[%c0_59, %c0_60, %c0_61], %140 {strides = array<i32>} : memref<1x8x32xf32, #tpu.memory_space<vmem>>, vector<1x8x32xf32>,
    return
  }
  func.func @transform_0(%arg0: i32) -> (i32, i32, i32) {
    %c0_i32 = arith.constant 0 : i32
    %c0_i32_0 = arith.constant 0 : i32
    %c0_i32_1 = arith.constant 0 : i32
    return %arg0, %c0_i32, %c0_i32_0 : i32, i32, i32
  }
  func.func @transform_1(%arg0: i32) -> (i32, i32) {
    %c0_i32 = arith.constant 0 : i32
    %c0_i32_0 = arith.constant 0 : i32
    %c0_i32_1 = arith.constant 0 : i32
    return %c0_i32, %c0_i32_0 : i32, i32
  }
  func.func @transform_2(%arg0: i32) -> (i32, i32) {
    %c0_i32 = arith.constant 0 : i32
    %c0_i32_0 = arith.constant 0 : i32
    %c0_i32_1 = arith.constant 0 : i32
    return %c0_i32, %c0_i32_0 : i32, i32
  }
  func.func @transform_3(%arg0: i32) -> (i32, i32) {
    %c0_i32 = arith.constant 0 : i32
    %c0_i32_0 = arith.constant 0 : i32
    %c0_i32_1 = arith.constant 0 : i32
    return %c0_i32, %c0_i32_0 : i32, i32
  }
  func.func @transform_4(%arg0: i32) -> (i32, i32) {
    %c0_i32 = arith.constant 0 : i32
    %c0_i32_0 = arith.constant 0 : i32
    %c0_i32_1 = arith.constant 0 : i32
    return %c0_i32, %c0_i32_0 : i32, i32
  }
  func.func @transform_5(%arg0: i32) -> (i32, i32) {
    %c0_i32 = arith.constant 0 : i32
    %c0_i32_0 = arith.constant 0 : i32
    %c0_i32_1 = arith.constant 0 : i32
    return %c0_i32, %c0_i32_0 : i32, i32
  }
  func.func @transform_6(%arg0: i32) -> (i32, i32) {
    %c0_i32 = arith.constant 0 : i32
    %c0_i32_0 = arith.constant 0 : i32
    %c0_i32_1 = arith.constant 0 : i32
    return %c0_i32, %c0_i32_0 : i32, i32
  }
  func.func @transform_7(%arg0: i32) -> (i32, i32) {
    %c0_i32 = arith.constant 0 : i32
    %c0_i32_0 = arith.constant 0 : i32
    %c0_i32_1 = arith.constant 0 : i32
    return %c0_i32, %c0_i32_0 : i32, i32
  }
  func.func @transform_8(%arg0: i32) -> (i32, i32) {
    %c0_i32 = arith.constant 0 : i32
    %c0_i32_0 = arith.constant 0 : i32
    %c0_i32_1 = arith.constant 0 : i32
    return %c0_i32, %c0_i32_0 : i32, i32
  }
  func.func @transform_9(%arg0: i32) -> (i32, i32) {
    %c0_i32 = arith.constant 0 : i32
    %c0_i32_0 = arith.constant 0 : i32
    %c0_i32_1 = arith.constant 0 : i32
    return %c0_i32, %c0_i32_0 : i32, i32
  }
  func.func @transform_10(%arg0: i32) -> (i32, i32) {
    %c0_i32 = arith.constant 0 : i32
    %c0_i32_0 = arith.constant 0 : i32
    %c0_i32_1 = arith.constant 0 : i32
    return %c0_i32, %c0_i32_0 : i32, i32
  }
  func.func @transform_11(%arg0: i32) -> (i32, i32, i32) {
    %c0_i32 = arith.constant 0 : i32
    %c0_i32_0 = arith.constant 0 : i32
    %c0_i32_1 = arith.constant 0 : i32
    return %arg0, %c0_i32, %c0_i32_0 : i32, i32, i32
  }
}

</mosaic_0001>

<bundles_post_ra>
// kernel: tpu_custom_call.1
= control target key start
LH: loop header
LB: loop body
LE: loop exit
PB: predicated region body
PF: predicated region fallthrough
CT: control target
= control target key end

     0   :  { %s1979_s0 = inlined_call_operand.vmem [shape: f32[2,8,32], index: 0, kind: input, shape index: {}]   ;;  %s1980_s1 = inlined_call_operand.vmem [shape: bf16[32,96], index: 1, kind: input, shape index: {}]   ;;  %s1981_s2 = inlined_call_operand.vmem [shape: bf16[32,32], index: 2, kind: input, shape index: {}]   ;;  %s1982_s3 = inlined_call_operand.vmem [shape: f32[1,32], index: 3, kind: input, shape index: {}]   ;;  %s1983_s4 = inlined_call_operand.vmem [shape: f32[1,32], index: 4, kind: input, shape index: {}]   ;;  %s1984_s5 = inlined_call_operand.vmem [shape: f32[1,32], index: 5, kind: input, shape index: {}]   ;;  %s1985_s6 = inlined_call_operand.vmem [shape: f32[1,32], index: 6, kind: input, shape index: {}]   ;;  %s1986_s7 = inlined_call_operand.hbm [shape: bf16[32,64], index: 7, kind: input, shape index: {}]   ;;  %s1987_s8 = inlined_call_operand.vmem [shape: f32[1,64], index: 8, kind: input, shape index: {}]   ;;  %s1988_s9 = inlined_call_operand.vmem [shape: bf16[64,32], index: 9, kind: input, shape index: {}]   ;;  %s1989_s10 = inlined_call_operand.vmem [shape: f32[1,32], index: 10, kind: input, shape index: {}]   ;;  %s1990_s11 = inlined_call_operand.hbm [shape: f32[2,8,32], index: 11, kind: output, shape index: {}]  }
   0x1   :  { %1994 = sst [smem:[#allocation10_spill]] %s1979_s0 }
   0x2   :  { %16 = vsyncpa [#allocation4], 0 }
   0x3   :  { %17 = vsyncpa [#allocation5], 0 }
   0x4   :  { %19 = vsyncpa [#allocation5 + $0x1], 0  ;;  %s1708_s17 = smov 0   ;;  %s1710_s18 = smov 0  }
   0x5   :  { %s1712_s19 = smov 0   ;;  %s1714_s20 = smov 0  }
   0x6 LB: > { %s1729_s21 = sadd.s32 4294967295, %s1626_s20   ;;  %s1280_s22 = sadd.s32 4294967294, %s1626_s20   ;;  %s1626_s20 = sphi %s1714_s20, %s2010_s20   ;;  %s1622_s19 = sphi %s1712_s19, %s2009_s19   ;;  %s1618_s18 = sphi %s1710_s18, %s2008_s18   ;;  %s1614_s17 = sphi %s1708_s17, %s2007_s17  }
   0x7   : > { %s1733_s23 = sadd.s32 1, %s1626_s20   ;;  %s268_s24 = sadd.s32 1, %s1622_s19 }
   0x8   : > { %s265_s25 = ssub.s32 %s1626_s20, %s1733_s23  ;;  %p278_p0 = scmp.ne.s32.totalorder %s1622_s19, %s1618_s18 }
   0x9   : > { %p266_p1 = scmp.eq.s32.totalorder %s265_s25, 0  ;;  %p279_p2 = scmp.eq.s32.totalorder %s1729_s21, 1 }
   0xa   : > { %p284_p3 = scmp.ne.s32.totalorder %s1618_s18, %s1614_s17  ;;  %p285_p4 = scmp.eq.s32.totalorder %s1280_s22, 1 }
   0xb   : > { %s1744_s26 = scalar_select %p266_p1, %s1622_s19, %s268_s24  }
   0xc   : > { %p1746_p5 = por %p279_p2, %p278_p0  ;;  %p1750_p6 = por %p285_p4, %p284_p3 }
   0xd   : > { %1995 = sst [smem:[#allocation9_spill]] %s1744_s26  ;;  %p1281_p7 = scmp.ge.s32.totalorder %s1626_s20, 1 }
   0xe   : > { %s1996_s27 = scalar_select %p1746_p5, 1, 0 }
   0xf   : > { %s1997_s28 = scalar_select %p1750_p6, 1, 0 }
  0x10   : > { %p292_p8 = scmp.lt.s32.totalorder %s1626_s20, 3  ;;  %p1991_p9 = scmp.eq.s32.totalorder %s1729_s21, 0 }
  0x11   : > { %s1628_s30 = smov [#allocation3]   ;;  %s1532_s16 = scalar_lea.hbm %s1986_s7, 256 }
  0x12   : > { %p1757_p10 = pnand %p1281_p7, %p292_p8  ;;  %s322_s12 = sshll.u32 %s1628_s30, 4  ;;  %s323_s12 = int_to_ptr.vmem [resolvable:$true] %s322_s12 }
  0x13   : > { %p1533_p13 = scmp.ne.s32.totalorder %s1986_s7, %s1532_s16  ;;  %p1539_p3 = scmp.lt.u32.totalorder %s1532_s16, %s1986_s7 }
  0x14   : > { %s1998_s29 = scalar_select %p1757_p10, 1, 0 }
  0x15   : > { %p1440_p11 = pneg %p1757_p10 }
  0x17   : > { %p1765_p12 = pnand %p1991_p9, %p1440_p11 }
  0x19   : > { %p1534_p0 = pneg %p1765_p12 }
  0x1b   : > { %p1535_p1 = pnand %p1534_p0, %p1533_p13 }
  0x1d   : > { %p1536_p2 = pneg %p1535_p1 }
  0x1f   : > { %p1541_p4 = pnand %p1539_p3, %p1536_p2 }
  0x21   : > { %1544 = shalt.err (!%p1541_p4)
}
  0x22   : > { %s1545_s26 = scalar_lea.vmem %s323_s12, 256  ;;  %p1553_p9 = scmp.lt.s32.totalorder %s323_s12, %s323_s12 }
  0x23   : > { %p1546_p7 = scmp.ne.s32.totalorder %s323_s12, %s1545_s26  ;;  %p1554_p6 = scmp.lt.s32.totalorder %s1545_s26, %s1545_s26 }
  0x25   : > { %p1548_p8 = pnand %p1546_p7, %p1534_p0  ;;  %p1555_p5 = por %p1554_p6, %p1553_p9 }
  0x27   : > { %p1549_p11 = pneg %p1548_p8 }
  0x29   : > { %p1556_p10 = pnand %p1555_p5, %p1549_p11 }
  0x2b   : > { %1559 = shalt.err (!%p1556_p10)
}
  0x2c   : > { %s1629_s14 = smov 64   ;;  %s1630_s15 = smov 4  }
  0x2d   : > { %1443 = dma.hbm_to_vmem [thread:$0]  (!%p1765_p12), %s1986_s7, 256, %s323_s12, [#allocation4], %s1629_s14, %s1629_s14, %s1630_s15  }
  0x2e   : > { %p2000_p13 = scmp.ne.s32.totalorder %s1998_s29, 0 }
  0x2f   : > { %p2001_p1 = scmp.eq.s32.totalorder (!%p2000_p13), %s1729_s21, 0 }
  0x30   : > { %354 = sbr.rel (%p2000_p13) target bundleno = 2620 (0xa3c), region = 64 }
  0x37   : > { %1605 = dma.done.wait (%p2001_p1), [#allocation4], 256   ;;  %p2002_p0 = pmov %p2001_p1 }
  0x38   : > { %p393_p5 = scmp.lt.s32.totalorder %s1729_s21, 1  ;;  %v1631_v0 = vmov 0.0   ;;  %vm1632_vm0 = vmmov 0   ;;  %s2003_s0 = sld [smem:[#allocation10_spill]]  ;;  %v1502_v1 = vld [vmem:[%s1980_s1] sm:$0xff]   ;;  %v1503_v2 = vld [vmem:[%s1980_s1 + $0x8] sm:$0xff]  }
  0x39   : > { %1607 = vsyncadd (%p2002_p0), [#allocation4], 4294967040  ;;  %1350 = vmatprep.subr.bf16.mxu0 %v1631_v0  ;;  %1354 = vmatprep.mubr.msk.bf16.mxu0 %vm1632_vm0, %v1631_v0  ;;  %vm416_vm1 = vcmask 261120   ;;  %s1633_s22 = smov 120   ;;  %s1634_s24 = smov 96   ;;  %vm464_vm2 = vcmask 64512  }
  0x3a   : > { %s394_s26 = scalar_select %p393_p5, %s1729_s21, 1  ;;  %1358 = vmatprep.subr.bf16.mxu1 %v1631_v0  ;;  %1360 = vmatprep.mubr.msk.bf16.mxu1 %vm1632_vm0, %v1631_v0  ;;  %vm528_vm3 = vcmask 1043456   ;;  %vm687_vm4 = vcmask 130112   ;;  %vm803_vm5 = vcmask 195712   ;;  %vm919_vm6 = vcmask 261312  }
  0x3b   : > { %1351 = vmatpush3.bf16.msra.mxu0 %v1502_v1  ;;  %s1637_s12 = smov 72   ;;  %s1638_s13 = smov 112   ;;  %vm1120_vm7 = vcmask 523264  }
  0x3c   : > { %s1287_s29 = sshll.u32 %s394_s26, 3  ;;  %1352 = vmatprep.subr.bf16.mxu0 %v1631_v0  ;;  %s1635_s26 = smov 80  }
  0x3d   : > { %s1640_s25 = smov 56   ;;  %s1641_s30 = smov 64  }
  0x3e   : > { %s396_s16 = scalar_lea.vmem %s2003_s0, %s1287_s29  ;;  %s1636_s29 = smov 88  }
  0x3f   : > { %v1808_v3 = vld [vmem:[%s396_s16] sm:$0xff]  ;;  %1353 = vmatpush3.bf16.msra.mxu0 %v1503_v2  ;;  %s1639_s16 = smov 104   ;;  %s1642_s14 = smov 40  }
  0x40   : > { %v399_v4 = vpack.c.bf16 %v1808_v3, %v1808_v3  ;;  %1364 = vmatprep.subr.bf16.mxu0 %v1631_v0  ;;  %s1643_s15 = smov 48   ;;  %p2004_p9 = scmp.ne.s32.totalorder %s1996_s27, 0 }
  0x42   : > { %1355 = vmatmul.mubr.msk.bf16.vlgmr.msra.gmra.mrb[0].mxu0 %vm416_vm1, %v399_v4 }
  0x43   : > { %1366 = vmatprep.mubr.msk.bf16.mxu0 %vm1632_vm0, %v1631_v0 }
 0x115   : > { %v454_v5 = vpop.f32.mrb[0].mxu0 }
 0x116   : > { %v1817_v6 = vpack.c.bf16 %v454_v5, %v454_v5  ;;  %v1356_v7 = vpop.f32.mrb[1].mxu0 }
 0x117   : > { %v457_v8 = vpop.f32.mrb[2].mxu0 }
 0x118   : > { %573 = vrot.lane.b32.xlu1 %v1817_v6, %s1633_s22  ;;  %462 = vrot.lane.b32.xlu0 %v1817_v6, %s1634_s24  ;;  %v1357_v9 = vpop.f32.mrb[3].mxu0  ;;  %s1644_s22 = smov 8   ;;  %s390_s24 = sand.u32 1, %s1618_s18  }
 0x11c   : > { %691 = vrot.lane.b32.xlu1 %v1817_v6, %s1635_s26  ;;  %575 = vrot.lane.b32.xlu0 %v1817_v6, %s1636_s29  ;;  %s1286_s26 = sshll.u32 %s390_s24, 3  ;;  %s1196_s29 = scalar_lea.sflag [#allocation5], %s390_s24 }
 0x120   : > { %807 = vrot.lane.b32.xlu1 %v1817_v6, %s1637_s12  ;;  %689 = vrot.lane.b32.xlu0 %v1817_v6, %s1638_s13  ;;  %s1645_s13 = smov 16  }
 0x124   : > { %805 = vrot.lane.b32.xlu0 %v1817_v6, %s1639_s16  ;;  %s1646_s16 = smov 24  }
 0x18a   : > { %v463_v10 = vpop.permute.xlu0 %462  ;;  %v574_v13 = vpop.permute.xlu1 %573 }
 0x18b   : > { %v469_v11 = vsel %vm464_vm2, %v463_v10, 0 }
 0x18c   : > { %1359 = vmatpush3.bf16.xpose.msra.mxu1 %v469_v11 }
 0x18d   : > { %1370 = vmatprep.subr.bf16.mxu1 %v1631_v0 }
 0x18e   : > { %v576_v12 = vpop.permute.xlu0 %575  ;;  %v692_v15 = vpop.permute.xlu1 %691 }
 0x18f   : > { %v581_v14 = vsel %vm464_vm2, %v576_v12, 0  ;;  %v697_v16 = vsel %vm464_vm2, %v692_v15, 0 }
 0x192   : > { %v808_v17 = vpop.permute.xlu1 %807  ;;  %v690_v18 = vpop.permute.xlu0 %689 }
 0x193   : > { %1361 = vmatmul.mubr.msk.bf16.vlgmr.msra.gmra.mrb[0].mxu1 %vm464_vm2, %v1817_v6  ;;  %v813_v19 = vsel %vm464_vm2, %v808_v17, 0 }
 0x194   : > { %1371 = vmatpush3.bf16.xpose.msra.mxu1 %v581_v14  ;;  %1372 = vmatprep.mubr.msk.bf16.mxu1 %vm1632_vm0, %v1631_v0 }
 0x195   : > { %1382 = vmatprep.subr.bf16.mxu1 %v1631_v0 }
 0x196   : > { %v806_v20 = vpop.permute.xlu0 %805 }
 0x19b   : > { %1373 = vmatmul.mubr.msk.bf16.vlgmr.msra.gmra.mrb[4].mxu1 %vm464_vm2, %v574_v13 }
 0x19c   : > { %1383 = vmatpush3.bf16.xpose.msra.mxu1 %v697_v16  ;;  %1384 = vmatprep.mubr.msk.bf16.mxu1 %vm1632_vm0, %v1631_v0 }
 0x19d   : > { %1394 = vmatprep.subr.bf16.mxu1 %v1631_v0 }
 0x1a3   : > { %1385 = vmatmul.mubr.msk.bf16.vlgmr.msra.gmra.mrb[8].mxu1 %vm464_vm2, %v690_v18 }
 0x1a4   : > { %1395 = vmatpush3.bf16.xpose.msra.mxu1 %v813_v19  ;;  %1396 = vmatprep.mubr.msk.bf16.mxu1 %vm1632_vm0, %v1631_v0 }
 0x1a5   : > { %1406 = vmatprep.subr.bf16.mxu1 %v1631_v0 }
 0x1ab   : > { %1397 = vmatmul.mubr.msk.bf16.vlgmr.msra.gmra.mrb[12].mxu1 %vm464_vm2, %v806_v20 }
 0x1ac   : > { %1410 = vmatprep.mubr.msk.bf16.mxu1 %vm1632_vm0, %v1631_v0 }
 0x266   : > { %v505_v21 = vpop.f32.mrb[0].mxu1 }
 0x267   : > { %v1362_v22 = vpop.f32.mrb[1].mxu1  ;;  %v511_v23 = vsel %vm464_vm2, %v505_v21, -inf }
 0x268   : > { %512 = vmax.xlane.f32.xlu1 %v511_v23  ;;  %v508_v24 = vpop.f32.mrb[2].mxu1 }
 0x269   : > { %v1363_v25 = vpop.f32.mrb[3].mxu1 }
 0x26e   : > { %v617_v26 = vpop.f32.mrb[4].mxu1 }
 0x26f   : > { %v1374_v27 = vpop.f32.mrb[5].mxu1  ;;  %v623_v28 = vsel %vm464_vm2, %v617_v26, -inf }
 0x270   : > { %624 = vmax.xlane.f32.xlu0 %v623_v28  ;;  %v620_v29 = vpop.f32.mrb[6].mxu1 }
 0x271   : > { %v1375_v30 = vpop.f32.mrb[7].mxu1 }
 0x276   : > { %v733_v31 = vpop.f32.mrb[8].mxu1 }
 0x277   : > { %v1386_v32 = vpop.f32.mrb[9].mxu1  ;;  %v739_v33 = vsel %vm464_vm2, %v733_v31, -inf }
 0x278   : > { %740 = vmax.xlane.f32.xlu0 %v739_v33  ;;  %v736_v34 = vpop.f32.mrb[10].mxu1  ;;  %v1505_v32 = vld [vmem:[%s1981_s2 + $0x8] sm:$0xff]  }
 0x279   : > { %v1387_v35 = vpop.f32.mrb[11].mxu1 }
 0x27e   : > { %v849_v36 = vpop.f32.mrb[12].mxu1 }
 0x27f   : > { %v1398_v37 = vpop.f32.mrb[13].mxu1  ;;  %v855_v38 = vsel %vm464_vm2, %v849_v36, -inf }
 0x280   : > { %856 = vmax.xlane.f32.xlu1 %v855_v38  ;;  %v852_v39 = vpop.f32.mrb[14].mxu1 }
 0x281   : > { %v1399_v40 = vpop.f32.mrb[15].mxu1 }
 0x2f5   : > { %v513_v41 = vpop.xlane.xlu1 %512 }
 0x2f6   : > { %v514_v42 = vsub.f32 %v505_v21, %v513_v41 }
 0x2f8   : > { %v515_v43 = vmul.f32 1.442695, %v514_v42 }
 0x2fa   : > { %1512 = vpow2.f32 %v515_v43 }
 0x2fd   : > { %v625_v44 = vpop.xlane.xlu0 %624 }
 0x2fe   : > { %v626_v45 = vsub.f32 %v617_v26, %v625_v44 }
 0x300   : > { %v627_v46 = vmul.f32 1.442695, %v626_v45 }
 0x302   : > { %1514 = vpow2.f32 %v627_v46 }
 0x304   : > { %v1513_v47 = vpop.eup %1512 }
 0x305   : > { %v741_v48 = vpop.xlane.xlu0 %740  ;;  %v517_v49 = vsel %vm464_vm2, %v1513_v47, 0.0 }
 0x306   : > { %v742_v50 = vsub.f32 %v733_v31, %v741_v48  ;;  %518 = vadd.xlane.f32.xlu0 %v517_v49  ;;  %v1504_v31 = vld [vmem:[%s1981_s2] sm:$0xff]  }
 0x307   : > { %1407 = vmatpush3.bf16.msra.mxu1 %v1504_v31 }
 0x308   : > { %v743_v51 = vmul.f32 1.442695, %v742_v50  ;;  %1408 = vmatprep.subr.bf16.mxu1 %v1631_v0 }
 0x30a   : > { %1516 = vpow2.f32 %v743_v51 }
 0x30b   : > { %1409 = vmatpush3.bf16.msra.mxu1 %v1505_v32 }
 0x30c   : > { %v1515_v52 = vpop.eup %1514  ;;  %1422 = vmatprep.subr.bf16.mxu1 %v1631_v0 }
 0x30d   : > { %v629_v53 = vsel %vm464_vm2, %v1515_v52, 0.0  ;;  %v857_v56 = vpop.xlane.xlu1 %856 }
 0x30e   : > { %630 = vadd.xlane.f32.xlu1 %v629_v53  ;;  %v858_v57 = vsub.f32 %v849_v36, %v857_v56 }
 0x310   : > { %v859_v58 = vmul.f32 1.442695, %v858_v57  ;;  %v1506_v57 = vld [vmem:[#allocation3] sm:$0xff]  }
 0x312   : > { %1518 = vpow2.f32 %v859_v58  ;;  %v1507_v58 = vld [vmem:[#allocation3 + $0x8] sm:$0xff]  }
 0x314   : > { %v1517_v54 = vpop.eup %1516 }
 0x315   : > { %v745_v55 = vsel %vm464_vm2, %v1517_v54, 0.0 }
 0x316   : > { %746 = vadd.xlane.f32.xlu0 %v745_v55 }
 0x31c   : > { %v1519_v59 = vpop.eup %1518 }
 0x31d   : > { %v861_v60 = vsel %vm464_vm2, %v1519_v59, 0.0 }
 0x31f   : > { %635 = vrot.lane.b32.xlu1 %v1817_v6, %s1640_s25  ;;  %s1317_s25 = sshll.u32 %s1729_s21, 7  ;;  %s1647_s21 = smov [#allocation6]  }
 0x320   : > { %s1936_s0 = scalar_lea.hbm %s1990_s11, %s1317_s25 }
 0x32c   : > { %523 = vrot.lane.b32.xlu0 %v1817_v6, %s1641_s30  ;;  %s392_s30 = scalar_lea.vmem [#allocation6], %s1286_s26  ;;  %s1564_s26 = sshll.u32 %s1647_s21, 4  ;;  %s1565_s26 = int_to_ptr.vmem [resolvable:$false] %s1564_s26 }
 0x330   : > { %867 = vrot.lane.b32.xlu0 %v1817_v6, %s1642_s14  ;;  %s1209_s14 = sshll.u32 %s392_s30, 4  ;;  %s1938_s14 = int_to_ptr.vmem [resolvable:$true] %s1209_s14 }
 0x331   : > { %s1560_s12 = scalar_lea.vmem %s1938_s14, 128  ;;  %p1567_p2 = scmp.lt.s32.totalorder %s1938_s14, %s1565_s26 }
 0x332   : > { %p1561_p6 = scmp.ne.s32.totalorder %s1938_s14, %s1560_s12 }
 0x334   : > { %p1562_p10 = pnand %p1561_p6, %p2004_p9 }
 0x336   : > { %p1563_p12 = pneg %p1562_p10 }
 0x343   : > { %862 = vadd.xlane.f32.xlu1 %v861_v60 }
 0x354   : > { %751 = vrot.lane.b32.xlu1 %v1817_v6, %s1643_s15 }
 0x393   : > { %v519_v61 = vpop.xlane.xlu0 %518 }
 0x394   : > { %1520 = vrcp.f32 %v519_v61 }
 0x39b   : > { %v631_v62 = vpop.xlane.xlu1 %630 }
 0x39c   : > { %1522 = vrcp.f32 %v631_v62 }
 0x39e   : > { %v1521_v63 = vpop.eup %1520 }
 0x39f   : > { %v521_v2 = vmul.f32 %v1521_v63, %v1513_v47  ;;  %v636_v7 = vpop.permute.xlu1 %635 }
 0x3a0   : > { %v641_v10 = vsel %vm528_vm3, %v636_v7, 0 }
 0x3a1   : > { %v522_v8 = vpack.c.bf16 %v521_v2, %v521_v2 }
 0x3a3   : > { %v747_v1 = vpop.xlane.xlu0 %746 }
 0x3a4   : > { %1524 = vrcp.f32 %v747_v1  ;;  %v1302_v1 = vld [vmem:[%s1982_s3] ss:$0 sm:$0xff] }
 0x3a6   : > { %v1523_v9 = vpop.eup %1522 }
 0x3a7   : > { %v524_v4 = vpop.permute.xlu0 %523  ;;  %v633_v6 = vmul.f32 %v1523_v9, %v1515_v52  ;;  %v1510_v9 = vld [vmem:[%s1988_s9 + $0x10] sm:$0xff]  }
 0x3a8   : > { %v530_v5 = vsel %vm528_vm3, %v524_v4, 0  ;;  %v1303_v4 = vld [vmem:[%s1983_s4] ss:$0 sm:$0xff] }
 0x3a9   : > { %1365 = vmatpush3.bf16.msra.mxu0 %v530_v5  ;;  %v634_v11 = vpack.c.bf16 %v633_v6, %v633_v6  ;;  %v1304_v6 = vld [vmem:[%s1987_s8] ss:$0 sm:$0xff] }
 0x3aa   : > { %1376 = vmatprep.subr.bf16.mxu0 %v1631_v0 }
 0x3ab   : > { %v868_v17 = vpop.permute.xlu0 %867 }
 0x3ac   : > { %1367 = vmatmul.mubr.msk.bf16.vlgmr.msra.gmra.mrb[4].mxu0 %vm464_vm2, %v522_v8  ;;  %v873_v19 = vsel %vm528_vm3, %v868_v17, 0 }
 0x3ad   : > { %1377 = vmatpush3.bf16.msra.mxu0 %v641_v10  ;;  %1378 = vmatprep.mubr.msk.bf16.mxu0 %vm1632_vm0, %v1631_v0  ;;  %v1511_v10 = vld [vmem:[%s1988_s9 + $0x18] sm:$0xff]  }
 0x3ae   : > { %1388 = vmatprep.subr.bf16.mxu0 %v1631_v0  ;;  %v1525_v12 = vpop.eup %1524 }
 0x3af   : > { %v749_v14 = vmul.f32 %v1525_v12, %v1517_v54 }
 0x3b1   : > { %v750_v18 = vpack.c.bf16 %v749_v14, %v749_v14 }
 0x3b4   : > { %1379 = vmatmul.mubr.msk.bf16.vlgmr.msra.gmra.mrb[8].mxu0 %vm464_vm2, %v634_v11 }
 0x3b5   : > { %1390 = vmatprep.mubr.msk.bf16.mxu0 %vm1632_vm0, %v1631_v0 }
 0x3d0   : > { %v863_v13 = vpop.xlane.xlu1 %862 }
 0x3d1   : > { %1526 = vrcp.f32 %v863_v13 }
 0x3d4   : > { %v752_v15 = vpop.permute.xlu1 %751 }
 0x3d5   : > { %v757_v16 = vsel %vm528_vm3, %v752_v15, 0 }
 0x3d6   : > { %1389 = vmatpush3.bf16.msra.mxu0 %v757_v16 }
 0x3d7   : > { %1400 = vmatprep.subr.bf16.mxu0 %v1631_v0 }
 0x3d9   : > { %1391 = vmatmul.mubr.msk.bf16.vlgmr.msra.gmra.mrb[12].mxu0 %vm464_vm2, %v750_v18 }
 0x3da   : > { %1401 = vmatpush3.bf16.msra.mxu0 %v873_v19  ;;  %1402 = vmatprep.mubr.msk.bf16.mxu0 %vm1632_vm0, %v1631_v0 }
 0x3db   : > { %v1527_v20 = vpop.eup %1526  ;;  %1414 = vmatprep.subr.bf16.mxu0 %v1631_v0 }
 0x3dc   : > { %v865_v21 = vmul.f32 %v1527_v20, %v1519_v59  ;;  %v1509_v59 = vld [vmem:[%s1988_s9 + $0x8] sm:$0xff]  }
 0x3de   : > { %v866_v22 = vpack.c.bf16 %v865_v21, %v865_v21 }
 0x3e1   : > { %1403 = vmatmul.mubr.msk.bf16.vlgmr.msra.gmra.mrb[16].mxu0 %vm464_vm2, %v866_v22 }
 0x3e2   : > { %1418 = vmatprep.mubr.msk.bf16.mxu0 %vm1632_vm0, %v1631_v0  ;;  %1415 = vmatpush3.bf16.msra.mxu0 %v1506_v57 }
 0x3e3   : > { %1416 = vmatprep.subr.bf16.mxu0 %v1631_v0 }
 0x3e6   : > { %1417 = vmatpush3.bf16.msra.mxu0 %v1507_v58 }
 0x47f   : > { %v566_v23 = vpop.f32.mrb[4].mxu0 }
 0x480   : > { %572 = vst.msk [vmem:[#allocation2] sm:$0xff] %vm464_vm2, %v566_v23  ;;  %v1368_v24 = vpop.f32.mrb[5].mxu0 }
 0x481   : > { %v569_v25 = vpop.f32.mrb[6].mxu0 }
 0x482   : > { %v1369_v26 = vpop.f32.mrb[7].mxu0 }
 0x487   : > { %v677_v27 = vpop.f32.mrb[8].mxu0 }
 0x488   : > { %684 = vrot.lane.b32.xlu1 %v677_v27, %s1644_s22  ;;  %v1380_v28 = vpop.f32.mrb[9].mxu0 }
 0x489   : > { %v680_v29 = vpop.f32.mrb[10].mxu0 }
 0x48a   : > { %v1381_v30 = vpop.f32.mrb[11].mxu0 }
 0x4ac   : > { %v793_v33 = vpop.f32.mrb[12].mxu0 }
 0x4ad   : > { %800 = vrot.lane.b32.xlu0 %v793_v33, %s1645_s13  ;;  %v1392_v34 = vpop.f32.mrb[13].mxu0  ;;  %s1566_s13 = scalar_lea.vmem %s1565_s26, 256 }
 0x4ae   : > { %v796_v35 = vpop.f32.mrb[14].mxu0  ;;  %v1314_v34 = vld [vmem:[%s1984_s5] ss:$0 sm:$0xff]  ;;  %p1568_p3 = scmp.lt.s32.totalorder %s1566_s13, %s1560_s12 }
 0x4af   : > { %v1393_v36 = vpop.f32.mrb[15].mxu0 }
 0x4b0   : > { %v1315_v36 = vld [vmem:[%s1985_s6] ss:$0 sm:$0xff]  ;;  %p1569_p4 = por %p1568_p3, %p1567_p2 }
 0x4b2   : > { %p1570_p7 = pnand %p1569_p4, %p1563_p12 }
 0x4b4   : > { %v909_v37 = vpop.f32.mrb[16].mxu0 }
 0x4b5   : > { %916 = vrot.lane.b32.xlu1 %v909_v37, %s1646_s16  ;;  %v1404_v38 = vpop.f32.mrb[17].mxu0 }
 0x4b6   : > { %v912_v39 = vpop.f32.mrb[18].mxu0 }
 0x4b7   : > { %v1405_v40 = vpop.f32.mrb[19].mxu0 }
 0x4fa   : > { %v685_v41 = vpop.permute.xlu1 %684 }
 0x4fb   : > { %688 = vst.msk [vmem:[#allocation2] sm:$0xff] %vm687_vm4, %v685_v41 }
 0x51f   : > { %v801_v42 = vpop.permute.xlu0 %800 }
 0x520   : > { %804 = vst.msk [vmem:[#allocation2] sm:$0xff] %vm803_vm5, %v801_v42 }
 0x527   : > { %v917_v43 = vpop.permute.xlu1 %916 }
 0x528   : > { %920 = vst.msk [vmem:[#allocation2] sm:$0xff] %vm919_vm6, %v917_v43 }
 0x52f   : > { %v921_v44 = vld [vmem:[#allocation2] sm:$0xff] }
 0x530   : > { %v922_v45 = vpack.c.bf16 %v921_v44, %v921_v44 }
 0x532   : > { %1411 = vmatmul.mubr.msk.bf16.vlgmr.msra.gmra.mrb[16].mxu1 %vm416_vm1, %v922_v45 }
 0x533   : > { %1430 = vmatprep.mubr.msk.bf16.mxu1 %vm1632_vm0, %v1631_v0 }
 0x605   : > { %v976_v46 = vpop.f32.mrb[16].mxu1 }
 0x606   : > { %v982_v47 = vadd.f32 %v976_v46, %v1808_v3  ;;  %v1412_v48 = vpop.f32.mrb[17].mxu1  ;;  %v1508_v3 = vld [vmem:[%s1988_s9] sm:$0xff]  }
 0x607   : > { %v979_v49 = vpop.f32.mrb[18].mxu1  ;;  %1423 = vmatpush3.bf16.msra.mxu1 %v1508_v3 }
 0x608   : > { %v1413_v50 = vpop.f32.mrb[19].mxu1  ;;  %v985_v51 = vsel %vm416_vm1, %v982_v47, 0.0  ;;  %1424 = vmatprep.subr.bf16.mxu1 %v1631_v0 }
 0x609   : > { %986 = vadd.xlane.f32.xlu0 %v985_v51 }
 0x60b   : > { %1425 = vmatpush3.bf16.msra.mxu1 %v1509_v59 }
 0x60c   : > { %1426 = vmatprep.subr.bf16.mxu1 %v1631_v0 }
 0x60f   : > { %1427 = vmatpush3.bf16.msra.mxu1 %v1510_v9 }
 0x610   : > { %1428 = vmatprep.subr.bf16.mxu1 %v1631_v0  ;;  %v1308_v0 = vld [vmem:[%s1989_s10] ss:$0 sm:$0xff] }
 0x613   : > { %1429 = vmatpush3.bf16.msra.mxu1 %v1511_v10 }
 0x696   : > { %v987_v52 = vpop.xlane.xlu0 %986 }
 0x697   : > { %v988_v53 = vmul.f32 0.03125, %v987_v52 }
 0x699   : > { %v989_v54 = vsub.f32 %v982_v47, %v988_v53 }
 0x69b   : > { %v990_v55 = vmul.f32 %v989_v54, %v989_v54 }
 0x69d   : > { %v991_v56 = vsel %vm416_vm1, %v990_v55, 0.0 }
 0x69e   : > { %992 = vadd.xlane.f32.xlu1 %v991_v56 }
 0x72b   : > { %v993_v60 = vpop.xlane.xlu1 %992 }
 0x72c   : > { %v994_v61 = vmul.f32 0.03125, %v993_v60 }
 0x72e   : > { %v995_v62 = vadd.f32 1e-05, %v994_v61 }
 0x730   : > { %1528 = vrsqrt.f32 %v995_v62 }
 0x73a   : > { %v1529_v63 = vpop.eup %1528 }
 0x73b   : > { %v997_v2 = vmul.f32 %v1529_v63, %v989_v54 }
 0x73d   : > { %v1004_v5 = vmul.f32 %v1302_v1, %v997_v2 }
 0x73f   : > { %v1011_v7 = vadd.f32 %v1303_v4, %v1004_v5 }
 0x741   : > { %v1012_v8 = vpack.c.bf16 %v1011_v7, %v1011_v7 }
 0x743   : > { %1419 = vmatmul.mubr.msk.bf16.vlgmr.msra.gmra.mrb[20].mxu0 %vm416_vm1, %v1012_v8 }
 0x816   : > { %v1073_v11 = vpop.f32.mrb[20].mxu0 }
 0x817   : > { %v1074_v12 = vadd.f32 %v1304_v6, %v1073_v11  ;;  %v1420_v13 = vpop.f32.mrb[21].mxu0 }
 0x818   : > { %v1076_v14 = vpop.f32.mrb[22].mxu0 }
 0x819   : > { %v1079_v15 = vmax.f32 %v1074_v12, 0.0  ;;  %v1421_v16 = vpop.f32.mrb[23].mxu0 }
 0x81b   : > { %v1080_v17 = vpack.c.bf16 %v1079_v15, %v1079_v15 }
 0x81d   : > { %1431 = vmatmul.mubr.msk.bf16.vlgmr.msra.gmra.mrb[20].mxu1 %vm1120_vm7, %v1080_v17 }
 0x8f0   : > { %v1158_v18 = vpop.f32.mrb[20].mxu1 }
 0x8f1   : > { %v1159_v19 = vadd.f32 %v1308_v0, %v1158_v18  ;;  %v1432_v20 = vpop.f32.mrb[21].mxu1 }
 0x8f2   : > { %v1161_v21 = vpop.f32.mrb[22].mxu1 }
 0x8f3   : > { %v1433_v22 = vpop.f32.mrb[23].mxu1  ;;  %v1164_v23 = vadd.f32 %v1159_v19, %v1011_v7 }
 0x8f5   : > { %v1167_v24 = vsel %vm416_vm1, %v1164_v23, 0.0 }
 0x8f6   : > { %1168 = vadd.xlane.f32.xlu0 %v1167_v24 }
 0x983   : > { %v1169_v25 = vpop.xlane.xlu0 %1168 }
 0x984   : > { %v1170_v26 = vmul.f32 0.03125, %v1169_v25 }
 0x986   : > { %v1171_v27 = vsub.f32 %v1164_v23, %v1170_v26 }
 0x988   : > { %v1172_v28 = vmul.f32 %v1171_v27, %v1171_v27 }
 0x98a   : > { %v1173_v29 = vsel %vm416_vm1, %v1172_v28, 0.0 }
 0x98b   : > { %1174 = vadd.xlane.f32.xlu0 %v1173_v29 }
 0xa18   : > { %v1175_v30 = vpop.xlane.xlu0 %1174 }
 0xa19   : > { %v1176_v31 = vmul.f32 0.03125, %v1175_v30 }
 0xa1b   : > { %v1177_v32 = vadd.f32 1e-05, %v1176_v31 }
 0xa1d   : > { %1530 = vrsqrt.f32 %v1177_v32 }
 0xa27   : > { %v1531_v33 = vpop.eup %1530 }
 0xa28   : > { %v1179_v35 = vmul.f32 %v1531_v33, %v1171_v27 }
 0xa2a   : > { %v1186_v37 = vmul.f32 %v1314_v34, %v1179_v35 }
 0xa2c   : > { %v1193_v38 = vadd.f32 %v1315_v36, %v1186_v37 }
 0xa2e   : > { %1194 = vst.msk [vmem:[%s392_s30] sm:$0xff] %vm416_vm1, %v1193_v38 }
 0xa2f   : > { %1573 = shalt.err (!%p1570_p7)
}
 0xa30   : > { %s1574_s24 = scalar_lea.hbm %s1936_s0, 128  ;;  %s1578_s30 = scalar_lea.hbm %s1990_s11, 256 }
 0xa31   : > { %p1575_p8 = scmp.ne.s32.totalorder %s1936_s0, %s1574_s24  ;;  %p1579_p1 = scmp.lt.u32.totalorder %s1936_s0, %s1990_s11 }
 0xa32   : > { %p1580_p0 = scmp.lt.u32.totalorder %s1578_s30, %s1574_s24  ;;  %p1582_p6 = scmp.lt.u32.totalorder %s1574_s24, %s1936_s0 }
 0xa33   : > { %p1576_p11 = pnand %p1575_p8, %p2004_p9 }
 0xa34   : > { %p1581_p5 = por %p1580_p0, %p1579_p1 }
 0xa35   : > { %p1577_p13 = pneg %p1576_p11 }
 0xa36   : > { %p1583_p10 = por %p1582_p6, %p1581_p5 }
 0xa38   : > { %p1584_p12 = pnand %p1583_p10, %p1577_p13 }
 0xa3a   : > { %1587 = shalt.err (!%p1584_p12)
}
 0xa3b   : > { %1438 = dma.vmem_to_hbm [thread:$0]  (%p2004_p9), %s1938_s14, 128, %s1936_s0, %s1196_s29  }
 0xa3c PF: > { %p1450_p2 = scmp.ge.s32.totalorder %s1626_s20, 2  ;;  %s1221_s12 = sand.u32 1, %s1614_s17  }
 0xa3d   : > { %p2005_p3 = scmp.ne.s32.totalorder %s1997_s28, 0  ;;  %s1222_s21 = scalar_lea.sflag [#allocation5], %s1221_s12 }
 0xa3f   : > { %p1445_p4 = pnand %p1450_p2, %p2005_p3 }
 0xa41   : > { %1609 = dma.done.wait (!%p1445_p4), %s1222_s21, 128  }
 0xa42   : > { %1611 = vsyncadd (!%p1445_p4), %s1222_s21, 4294967168  ;;  %s2006_s26 = sld [smem:[#allocation9_spill]]  ;;  %p22_p7 = scmp.ge.s32.totalorder %s1733_s23, 4  }
 0xa43   : > { %s2007_s17 = smov %s1618_s18  ;;  %s2008_s18 = smov %s1622_s19 }
 0xa44   : > { %s2010_s20 = smov %s1733_s23  ;;  %24 = sbr.rel (!%p22_p7) target bundleno = 6 (0x6), region = 104 }
 0xa48   : > { %s2009_s19 = smov %s2006_s26 }
 0xa4b   :  { %1227 = vsyncpa [#allocation4], 1 }
 0xa4c   :  { %1229 = vsyncpa [#allocation4 + $0x1], 1 }
 0xa4d   :  { %1230 = vsyncpa [#allocation5], 1 }
 0xa4e   :  { %1232 = vsyncpa [#allocation5 + $0x1], 1 }

</bundles_post_ra>
